<compile_context>
chip_gen: v7x
topology: tpu7x:2x2x1
jax: 0.10.0
libtpu: 0.0.40
codegen_flags: <defaults>
</compile_context>

<pallas_src>
import functools
import math

import jax
import jax.numpy as jnp
from jax.experimental import pallas as pl
from jax.experimental.pallas import tpu as pltpu


def _actor_td3_kernel(x_ref, w1_ref, w2_ref, w3_ref, w4_ref, b_ref, out_ref,
                      *, mid_dim, num_actions):
    """3x (Linear + ReLU) -> Linear -> tanh, all resident in VMEM."""
    # Packed bias slab: row r holds layer (r+1)'s bias, zero-padded on lanes.
    b1 = b_ref[0:1, :mid_dim]
    b2 = b_ref[1:2, :mid_dim]
    b3 = b_ref[2:3, :mid_dim]
    b4 = b_ref[3:4, :num_actions]

    x = x_ref[...]
    h = jnp.maximum(
        jnp.dot(x, w1_ref[...], preferred_element_type=jnp.float32) + b1, 0.0)
    h = jnp.maximum(
        jnp.dot(h, w2_ref[...], preferred_element_type=jnp.float32) + b2, 0.0)
    h = jnp.maximum(
        jnp.dot(h, w3_ref[...], preferred_element_type=jnp.float32) + b3, 0.0)
    a = jnp.tanh(
        jnp.dot(h, w4_ref[...], preferred_element_type=jnp.float32) + b4)
    out_ref[...] = a.astype(out_ref.dtype)


def _full_spec(shape):
    """Full-extent VMEM block; ndim bound via default arg (no closure bug)."""
    n = len(shape)
    return pl.BlockSpec(shape, lambda *_, _n=n: (0,) * _n)


def actor_td3_forward(state, params, *, batch_tile=256):
    """Pallas forward pass of ActorTD3.

    state:  [B, state_dim] float32
    params: dict with w1..w4 ([in, out], i.e. torch weight transposed) and
            "b_packed" ([4, max(mid_dim, num_actions)], zero-padded biases).
    returns: [B, num_actions] float32  (tanh-squashed actions)
    """
    B, state_dim = state.shape
    mid_dim = params["w1"].shape[1]
    num_actions = params["w4"].shape[1]
    bias = params["b_packed"]

    kernel = functools.partial(
        _actor_td3_kernel, mid_dim=mid_dim, num_actions=num_actions)
    args = (state, params["w1"], params["w2"], params["w3"], params["w4"], bias)
    out_shape = jax.ShapeDtypeStruct((B, num_actions), jnp.float32)

    if B <= batch_tile or B % batch_tile != 0:
        # Small batch: single launch, no grid, everything in VMEM at once.
        return pl.pallas_call(
            kernel,
            out_shape=out_shape,
            in_specs=[_full_spec(a.shape) for a in args],
            out_specs=_full_spec((B, num_actions)),
        )(*args)

    # Large batch: tile the batch axis; weights/bias stay resident (index_map
    # returns the same block), batch axis marked "parallel" for megacore.
    def _resident(shape):
        n = len(shape)
        return pl.BlockSpec(shape, lambda i, _n=n: (0,) * _n)

    in_specs = [
        pl.BlockSpec((batch_tile, state_dim), lambda i: (i, 0)),
        _resident(params["w1"].shape),
        _resident(params["w2"].shape),
        _resident(params["w3"].shape),
        _resident(params["w4"].shape),
        _resident(bias.shape),
    ]
    out_specs = pl.BlockSpec((batch_tile, num_actions), lambda i: (i, 0))

    return pl.pallas_call(
        kernel,
        out_shape=out_shape,
        grid=(B // batch_tile,),
        in_specs=in_specs,
        out_specs=out_specs,
        compiler_params=pltpu.CompilerParams(
            dimension_semantics=("parallel",)),
    )(*args)


def init_params(key, state_dim, mid_dim, num_actions):
    """Deterministic init matching torch.nn.Linear default:
    U(-1/sqrt(fan_in), 1/sqrt(fan_in)) for both weights and biases.
    Weights stored as [in, out] (transposed vs torch) so the kernel does x@W+b.
    Biases are packed once here into a single [4, max(mid, na)] slab."""
    dims = [state_dim, mid_dim, mid_dim, mid_dim, num_actions]
    params = {}
    biases = []
    keys = jax.random.split(key, 2 * (len(dims) - 1))
    for i in range(len(dims) - 1):
        fan_in, fan_out = dims[i], dims[i + 1]
        bound = 1.0 / math.sqrt(fan_in)
        wk, bk = keys[2 * i], keys[2 * i + 1]
        params[f"w{i + 1}"] = jax.random.uniform(
            wk, (fan_in, fan_out), jnp.float32, -bound, bound)
        b = jax.random.uniform(bk, (1, fan_out), jnp.float32, -bound, bound)
        params[f"b{i + 1}"] = b
        biases.append(b)

    width = max(mid_dim, num_actions)
    packed = [jnp.pad(b, ((0, 0), (0, width - b.shape[1]))) for b in biases]
    params["b_packed"] = jnp.concatenate(packed, axis=0)  # [4, width]
    return params


def reference_forward(state, params):
    """Pure-JAX reference for a sanity check."""
    h = state
    for i in range(1, 4):
        h = jnp.maximum(h @ params[f"w{i}"] + params[f"b{i}"], 0.0)
    return jnp.tanh(h @ params["w4"] + params["b4"])


if __name__ == "__main__":
    state_dim, mid_dim, num_actions = 24, 32, 8
    batch = 8

    key = jax.random.PRNGKey(0)
    k_params, k_state = jax.random.split(key, 2)

    params = init_params(k_params, state_dim, mid_dim, num_actions)
    state = jax.random.normal(k_state, (batch, state_dim), jnp.float32)

    actions = actor_td3_forward(state, params)
    actions = jax.block_until_ready(actions)

    actions_ref = reference_forward(state, params)
    assert actions.shape == (batch, num_actions)
    assert jnp.all(jnp.abs(actions) <= 1.0)  # tanh-squashed
    assert jnp.allclose(actions, actions_ref, atol=1e-5, rtol=1e-5)

    print("KERNEL_OK")
</pallas_src>

<mosaic_0001>
module attributes {stable_mosaic.version = 11 : i64} {
  func.func @_actor_td3_kernel(%arg0: memref<8x24xf32, #tpu.memory_space<vmem>>, %arg1: memref<24x32xf32, #tpu.memory_space<vmem>>, %arg2: memref<32x32xf32, #tpu.memory_space<vmem>>, %arg3: memref<32x32xf32, #tpu.memory_space<vmem>>, %arg4: memref<32x8xf32, #tpu.memory_space<vmem>>, %arg5: memref<4x32xf32, #tpu.memory_space<vmem>>, %arg6: memref<8x8xf32, #tpu.memory_space<vmem>>) attributes {dimension_semantics = [], scalar_prefetch = 0 : i64, scratch_operands = 0 : i64, tpu.core_type = #tpu.core_type<tc>} {
    %c0 = arith.constant 0 : index
    %c0_0 = arith.constant 0 : index
    %0 = vector.load %arg5[%c0, %c0_0] : memref<4x32xf32, #tpu.memory_space<vmem>>, vector<1x32xf32>
    %c1 = arith.constant 1 : index
    %c0_1 = arith.constant 0 : index
    %1 = vector.load %arg5[%c1, %c0_1] : memref<4x32xf32, #tpu.memory_space<vmem>>, vector<1x32xf32>
    %c2 = arith.constant 2 : index
    %c0_2 = arith.constant 0 : index
    %2 = vector.load %arg5[%c2, %c0_2] : memref<4x32xf32, #tpu.memory_space<vmem>>, vector<1x32xf32>
    %c3 = arith.constant 3 : index
    %c0_3 = arith.constant 0 : index
    %3 = vector.load %arg5[%c3, %c0_3] : memref<4x32xf32, #tpu.memory_space<vmem>>, vector<1x8xf32>
    %c0_4 = arith.constant 0 : index
    %c0_5 = arith.constant 0 : index
    %4 = vector.load %arg0[%c0_4, %c0_5] : memref<8x24xf32, #tpu.memory_space<vmem>>, vector<8x24xf32>
    %c0_6 = arith.constant 0 : index
    %c0_7 = arith.constant 0 : index
    %5 = vector.load %arg1[%c0_6, %c0_7] : memref<24x32xf32, #tpu.memory_space<vmem>>, vector<24x32xf32>
    %cst = arith.constant dense<0.000000e+00> : vector<8x32xf32>
    %6 = tpu.matmul %4, %5, %cst {dimension_numbers = #tpu.dot_dimension_numbers<[1], [0], [0], [1], [0, 0, 1, 1], [], []>} : vector<8x24xf32>, vector<24x32xf32>, vector<8x32xf32> -> vector<8x32xf32>
    %7 = vector.broadcast %0 : vector<1x32xf32> to vector<8x32xf32>
    %8 = arith.addf %6, %7 : vector<8x32xf32>
    %cst_8 = arith.constant 0.000000e+00 : f32
    %9 = vector.broadcast %cst_8 : f32 to vector<8x32xf32>
    %10 = arith.maximumf %8, %9 : vector<8x32xf32>
    %c0_9 = arith.constant 0 : index
    %c0_10 = arith.constant 0 : index
    %11 = vector.load %arg2[%c0_9, %c0_10] : memref<32x32xf32, #tpu.memory_space<vmem>>, vector<32x32xf32>
    %cst_11 = arith.constant dense<0.000000e+00> : vector<8x32xf32>
    %12 = tpu.matmul %10, %11, %cst_11 {dimension_numbers = #tpu.dot_dimension_numbers<[1], [0], [0], [1], [0, 0, 1, 1], [], []>} : vector<8x32xf32>, vector<32x32xf32>, vector<8x32xf32> -> vector<8x32xf32>
    %13 = vector.broadcast %1 : vector<1x32xf32> to vector<8x32xf32>
    %14 = arith.addf %12, %13 : vector<8x32xf32>
    %cst_12 = arith.constant 0.000000e+00 : f32
    %15 = vector.broadcast %cst_12 : f32 to vector<8x32xf32>
    %16 = arith.maximumf %14, %15 : vector<8x32xf32>
    %c0_13 = arith.constant 0 : index
    %c0_14 = arith.constant 0 : index
    %17 = vector.load %arg3[%c0_13, %c0_14] : memref<32x32xf32, #tpu.memory_space<vmem>>, vector<32x32xf32>
    %cst_15 = arith.constant dense<0.000000e+00> : vector<8x32xf32>
    %18 = tpu.matmul %16, %17, %cst_15 {dimension_numbers = #tpu.dot_dimension_numbers<[1], [0], [0], [1], [0, 0, 1, 1], [], []>} : vector<8x32xf32>, vector<32x32xf32>, vector<8x32xf32> -> vector<8x32xf32>
    %19 = vector.broadcast %2 : vector<1x32xf32> to vector<8x32xf32>
    %20 = arith.addf %18, %19 : vector<8x32xf32>
    %cst_16 = arith.constant 0.000000e+00 : f32
    %21 = vector.broadcast %cst_16 : f32 to vector<8x32xf32>
    %22 = arith.maximumf %20, %21 : vector<8x32xf32>
    %c0_17 = arith.constant 0 : index
    %c0_18 = arith.constant 0 : index
    %23 = vector.load %arg4[%c0_17, %c0_18] : memref<32x8xf32, #tpu.memory_space<vmem>>, vector<32x8xf32>
    %cst_19 = arith.constant dense<0.000000e+00> : vector<8x8xf32>
    %24 = tpu.matmul %22, %23, %cst_19 {dimension_numbers = #tpu.dot_dimension_numbers<[1], [0], [0], [1], [0, 0, 1, 1], [], []>} : vector<8x32xf32>, vector<32x8xf32>, vector<8x8xf32> -> vector<8x8xf32>
    %25 = vector.broadcast %3 : vector<1x8xf32> to vector<8x8xf32>
    %26 = arith.addf %24, %25 : vector<8x8xf32>
    %27 = math.tanh %26 : vector<8x8xf32>
    %c0_20 = arith.constant 0 : index
    %c0_21 = arith.constant 0 : index
    %28 = vector.load %arg6[%c0_20, %c0_21] : memref<8x8xf32, #tpu.memory_space<vmem>>, vector<8x8xf32>
    tpu.vector_store %arg6[%c0_20, %c0_21], %27 {strides = array<i32>} : memref<8x8xf32, #tpu.memory_space<vmem>>, vector<8x8xf32>,
    return
  }
}

</mosaic_0001>

<bundles_post_ra>
// kernel: tpu_custom_call.1
= control target key start
LH: loop header
LB: loop body
LE: loop exit
PB: predicated region body
PF: predicated region fallthrough
CT: control target
= control target key end

     0   :  { %11 = vsyncpa [#allocation3], 0  ;;  %s701_s0 = inlined_call_operand.vmem [shape: f32[8,24], index: 0, kind: input, shape index: {}]   ;;  %s702_s1 = inlined_call_operand.hbm [shape: f32[24,32], index: 1, kind: input, shape index: {}]   ;;  %s703_s2 = inlined_call_operand.vmem [shape: f32[32,32], index: 2, kind: input, shape index: {}]   ;;  %s704_s3 = inlined_call_operand.hbm [shape: f32[32,32], index: 3, kind: input, shape index: {}]   ;;  %s705_s4 = inlined_call_operand.vmem [shape: f32[32,8], index: 4, kind: input, shape index: {}]   ;;  %s706_s5 = inlined_call_operand.vmem [shape: f32[4,32], index: 5, kind: input, shape index: {}]   ;;  %s707_s6 = inlined_call_operand.hbm [shape: f32[8,8], index: 6, kind: output, shape index: {}]  }
   0x1   :  { %12 = vsyncpa [#allocation6], 0 }
   0x2   :  { %13 = vsyncpa [#allocation4], 0  ;;  %s576_s21 = smov [#allocation2]   ;;  %s504_s25 = scalar_lea.hbm %s702_s1, 384 }
   0x3   :  { %s21_s22 = sshll.u32 %s576_s21, 4  ;;  %p505_p0 = scmp.ne.s32.totalorder %s702_s1, %s504_s25  ;;  %s22_s22 = int_to_ptr.vmem [resolvable:$true] %s21_s22 }
   0x4   :  { %p508_p1 = scmp.lt.u32.totalorder %s504_s25, %s702_s1 }
   0x6   :  { %p510_p2 = pnand %p508_p1, %p505_p0 }
   0x8   :  { %513 = shalt.err (!%p510_p2)
}
   0x9   :  { %s514_s30 = scalar_lea.vmem %s22_s22, 384  ;;  %p519_p4 = scmp.lt.s32.totalorder %s22_s22, %s22_s22 }
   0xa   :  { %p515_p3 = scmp.ne.s32.totalorder %s22_s22, %s514_s30  ;;  %p520_p5 = scmp.lt.s32.totalorder %s514_s30, %s514_s30 }
   0xc   :  { %p521_p6 = por %p520_p5, %p519_p4 }
   0xe   :  { %p522_p7 = pnand %p521_p6, %p515_p3 }
  0x10   :  { %525 = shalt.err (!%p522_p7)
}
  0x11   :  { %s577_s7 = smov 128   ;;  %s578_s8 = smov 8  }
  0x12   :  { %27 = dma.hbm_to_vmem [thread:$0]  %s702_s1, 384, %s22_s22, [#allocation3], %s577_s7, %s577_s7, %s578_s8  }
  0x13   :  { %s579_s11 = smov [#allocation5]   ;;  %s526_s15 = scalar_lea.hbm %s704_s3, 512 }
  0x14   :  { %s35_s12 = sshll.u32 %s579_s11, 4  ;;  %p527_p8 = scmp.ne.s32.totalorder %s704_s3, %s526_s15  ;;  %s36_s12 = int_to_ptr.vmem [resolvable:$true] %s35_s12 }
  0x15   :  { %p530_p9 = scmp.lt.u32.totalorder %s526_s15, %s704_s3 }
  0x17   :  { %p532_p10 = pnand %p530_p9, %p527_p8 }
  0x19   :  { %535 = shalt.err (!%p532_p10)
}
  0x1a   :  { %s536_s20 = scalar_lea.vmem %s36_s12, 512  ;;  %p541_p12 = scmp.lt.s32.totalorder %s36_s12, %s36_s12 }
  0x1b   :  { %p537_p11 = scmp.ne.s32.totalorder %s36_s12, %s536_s20  ;;  %p542_p13 = scmp.lt.s32.totalorder %s536_s20, %s536_s20 }
  0x1d   :  { %p543_p0 = por %p542_p13, %p541_p12 }
  0x1f   :  { %p544_p1 = pnand %p543_p0, %p537_p11 }
  0x21   :  { %547 = shalt.err (!%p544_p1)
}
  0x22   :  { %41 = dma.hbm_to_vmem [thread:$0]  %s704_s3, 512, %s36_s12, [#allocation6], %s577_s7, %s577_s7, %s578_s8  }
  0x23   :  { %570 = dma.done.wait [#allocation3], 384  }
  0x24   :  { %571 = vsyncadd [#allocation3], 4294966912 }
  0x25   :  { %572 = dma.done.wait [#allocation6], 512  }
  0x26   :  { %573 = vsyncadd [#allocation6], 4294966784  ;;  %v580_v0 = vmov 0.0|0.0   ;;  %vm581_vm0 = vmmov 0   ;;  %v582_v1 = vmov 0.0   ;;  %v57_v2 = vld [vmem:[#allocation2] sm:$0xff] }
  0x27   :  { %473 = vmatprep.subr.bf16.mxu0 %v580_v0  ;;  %437 = vmatprep.mubr.msk.f32.mxu0 %vm581_vm0, %v582_v1  ;;  %v58_v3 = vld [vmem:[#allocation2 + $0x8] sm:$0xff]  ;;  %v139_v5 = vld [vmem:[%s703_s2] sm:$0xff]  ;;  %v59_v8 = vld [vmem:[#allocation2 + $0x10] sm:$0xff]  ;;  %vm64_vm1 = vcmask 195584   ;;  %vm147_vm2 = vcmask 261120   ;;  %vm386_vm3 = vcmask 64512  }
  0x28   :  { %476 = vmatprep.subr.bf16.mxu1 %v580_v0  ;;  %448 = vmatprep.mubr.msk.f32.mxu1 %vm581_vm0, %v582_v1  ;;  %v474_v4 = vpack.c.bf16 %v58_v3, %v57_v2  ;;  %v140_v6 = vld [vmem:[%s703_s2 + $0x8] sm:$0xff]  ;;  %v56_v9 = vld [vmem:[%s701_s0] sm:$0xff]  ;;  %v141_v10 = vld [vmem:[%s703_s2 + $0x10] sm:$0xff] }
  0x29   :  { %v477_v7 = vpack.c.bf16 %v140_v6, %v139_v5  ;;  %v142_v11 = vld [vmem:[%s703_s2 + $0x18] sm:$0xff]  ;;  %v223_v14 = vld [vmem:[#allocation5 + $0x8] sm:$0xff]  ;;  %v224_v21 = vld [vmem:[#allocation5 + $0x10] sm:$0xff] }
  0x2a   :  { %475 = vmatpush3.bf16.msra.mxu0 %v474_v4  ;;  %v480_v12 = vpack.c.bf16 %v142_v11, %v141_v10  ;;  %v222_v13 = vld [vmem:[#allocation5] sm:$0xff]  ;;  %v404_v16 = vld [vmem:[%s706_s5] ss:$0 sm:$0xff]  ;;  %v225_v22 = vld [vmem:[#allocation5 + $0x18] sm:$0xff] }
  0x2b   :  { %435 = vmatprep.subr.mxu0 %v582_v1  ;;  %478 = vmatpush3.bf16.msra.mxu1 %v477_v7  ;;  %v483_v15 = vpack.c.bf16 %v223_v14, %v222_v13  ;;  %v486_v23 = vpack.c.bf16 %v225_v22, %v224_v21  ;;  %v304_v24 = vld [vmem:[%s705_s4] sm:$0xff]  ;;  %v305_v25 = vld [vmem:[%s705_s4 + $0x8] sm:$0xff]  ;;  %v306_v32 = vld [vmem:[%s705_s4 + $0x10] sm:$0xff] }
  0x2c   :  { %479 = vmatprep.subr.bf16.mxu1 %v580_v0  ;;  %v489_v26 = vpack.c.bf16 %v305_v25, %v304_v24  ;;  %v406_v27 = vld [vmem:[%s706_s5 + $0x1] ss:$0 sm:$0xff]  ;;  %v307_v33 = vld [vmem:[%s705_s4 + $0x18] sm:$0xff]  ;;  %v408_v35 = vld [vmem:[%s706_s5 + $0x2] ss:$0 sm:$0xff]  ;;  %s583_s4 = smov [#allocation7]  }
  0x2d   :  { %v492_v34 = vpack.c.bf16 %v307_v33, %v306_v32  ;;  %v410_v40 = vld [vmem:[%s706_s5 + $0x3] ss:$0 sm:$0xff]  ;;  %s394_s1 = sshll.u32 %s583_s4, 4  ;;  %s395_s1 = int_to_ptr.vmem [resolvable:$true] %s394_s1 }
  0x2e   :  { %436 = vmatpush3.msra.mxu0 %v59_v8  ;;  %s548_s21 = scalar_lea.vmem %s395_s1, 128  ;;  %p553_p3 = scmp.lt.s32.totalorder %s395_s1, %s395_s1 }
  0x2f   :  { %438 = vmatmul.mubr.msk.f32.vlgmr.msra.gmra.mrb[0].mxu0 %vm64_vm1, %v56_v9  ;;  %482 = vmatprep.subr.bf16.mxu0 %v580_v0  ;;  %p549_p2 = scmp.ne.s32.totalorder %s395_s1, %s548_s21  ;;  %p554_p4 = scmp.lt.s32.totalorder %s548_s21, %s548_s21 }
  0x30   :  { %459 = vmatprep.mubr.msk.f32.mxu0 %vm581_vm0, %v582_v1  ;;  %481 = vmatpush3.bf16.msra.mxu1 %v480_v12 }
  0x31   :  { %488 = vmatprep.subr.bf16.mxu1 %v580_v0  ;;  %484 = vmatpush3.bf16.msra.mxu0 %v483_v15  ;;  %p555_p5 = por %p554_p4, %p553_p3 }
  0x32   :  { %485 = vmatprep.subr.bf16.mxu0 %v580_v0 }
  0x33   :  { %p556_p6 = pnand %p555_p5, %p549_p2 }
  0x35   :  { %487 = vmatpush3.bf16.msra.mxu0 %v486_v23 }
 0x102   :  { %v134_v17 = vpop.f32.mrb[0].mxu0 }
 0x103   :  { %v135_v18 = vadd.f32 %v404_v16, %v134_v17  ;;  %v439_v19 = vpop.f32.mrb[1].mxu0 }
 0x105   :  { %v138_v20 = vmax.f32 %v135_v18, 0.0 }
 0x107   :  { %449 = vmatmul.mubr.msk.f32.vlgmr.msra.gmra.mrb[0].mxu1 %vm147_vm2, %v138_v20 }
 0x108   :  { %470 = vmatprep.mubr.msk.f32.mxu1 %vm581_vm0, %v582_v1  ;;  %490 = vmatpush3.bf16.msra.mxu1 %v489_v26 }
 0x109   :  { %491 = vmatprep.subr.bf16.mxu1 %v580_v0 }
 0x10c   :  { %493 = vmatpush3.bf16.msra.mxu1 %v492_v34 }
 0x1da   :  { %v217_v28 = vpop.f32.mrb[0].mxu1 }
 0x1db   :  { %v218_v29 = vadd.f32 %v406_v27, %v217_v28  ;;  %v450_v30 = vpop.f32.mrb[1].mxu1 }
 0x1dd   :  { %v221_v31 = vmax.f32 %v218_v29, 0.0 }
 0x1df   :  { %460 = vmatmul.mubr.msk.f32.vlgmr.msra.gmra.mrb[2].mxu0 %vm147_vm2, %v221_v31 }
 0x2b2   :  { %v299_v36 = vpop.f32.mrb[2].mxu0 }
 0x2b3   :  { %v300_v37 = vadd.f32 %v408_v35, %v299_v36  ;;  %v461_v38 = vpop.f32.mrb[3].mxu0 }
 0x2b5   :  { %v303_v39 = vmax.f32 %v300_v37, 0.0 }
 0x2b7   :  { %471 = vmatmul.mubr.msk.f32.vlgmr.msra.gmra.mrb[2].mxu1 %vm147_vm2, %v303_v39 }
 0x38a   :  { %v381_v41 = vpop.f32.mrb[2].mxu1 }
 0x38b   :  { %v382_v42 = vadd.f32 %v410_v40, %v381_v41  ;;  %v472_v43 = vpop.f32.mrb[3].mxu1 }
 0x38d   :  { %502 = vtanh.f32 %v382_v42 }
 0x397   :  { %v503_v44 = vpop.eup %502 }
 0x398   :  { %387 = vst.msk [vmem:[#allocation7] sm:$0xff] %vm386_vm3, %v503_v44 }
 0x399   :  { %559 = shalt.err (!%p556_p6)
}
 0x39a   :  { %s560_s5 = scalar_lea.hbm %s707_s6, 128 }
 0x39b   :  { %p561_p7 = scmp.ne.s32.totalorder %s707_s6, %s560_s5  ;;  %p564_p8 = scmp.lt.u32.totalorder %s560_s5, %s707_s6 }
 0x39d   :  { %p566_p9 = pnand %p564_p8, %p561_p7 }
 0x39f   :  { %569 = shalt.err (!%p566_p9)
}
 0x3a0   :  { %397 = dma.vmem_to_hbm [thread:$0]  %s395_s1, 128, %s707_s6, [#allocation4]  }
 0x3a1   :  { %574 = dma.done.wait [#allocation4], 128  }
 0x3a2   :  { %575 = vsyncadd [#allocation4], 4294967168 }
 0x3a3   :  { %401 = vsyncpa [#allocation3], 1 }
 0x3a4   :  { %402 = vsyncpa [#allocation6], 1 }
 0x3a5   :  { %403 = vsyncpa [#allocation4], 1 }

</bundles_post_ra>
